<compile_context>
chip_gen: v7x
topology: tpu7x:2x2x1
jax: 0.10.0
libtpu: 0.0.40
codegen_flags: <defaults>
</compile_context>

<pallas_src>
import math

import jax
import jax.numpy as jnp
from jax.experimental import pallas as pl
from jax.experimental.pallas import tpu as pltpu

_LANE = 128
_SUBLANE = 8


# ----------------------------------------------------------------------------
# Pallas kernel: fused GCN aggregate + (fused) update MLP + residual
# One grid step handles one lane-dense pack of BP graphs.
# ----------------------------------------------------------------------------
def gnca_kernel(adj_ref, x_ref, wc_ref, b1_ref, w2_ref, b2_ref, o_ref):
    x = x_ref[...]                      # [Np, BP*C] f32 (kept f32 for residual)
    mm = adj_ref.dtype                  # matmul operand dtype (bf16 by default)

    # GCN aggregation first (cheaper O(N^2) term): agg = adj @ x
    agg = jnp.dot(adj_ref[...], x.astype(mm),
                  preferred_element_type=jnp.float32)           # [Np, BP*C]

    # Fused Wg@W1: h = agg @ Wc + b1 ; ReLU  (Wc is block-diag over BP graphs)
    h = jnp.dot(agg.astype(mm), wc_ref[...],
                preferred_element_type=jnp.float32) + b1_ref[...]
    h = jnp.maximum(h, 0.0)                                     # [Np, BP*H]

    # Second Linear: upd = h @ W2 + b2
    upd = jnp.dot(h.astype(mm), w2_ref[...],
                  preferred_element_type=jnp.float32) + b2_ref[...]

    # residual: xx.clone() + update
    o_ref[...] = x + upd


# ----------------------------------------------------------------------------
# Glue: dense normalized adjacency  D^{-1/2} (A + I) D^{-1/2}
# ----------------------------------------------------------------------------
def _build_adj_norm(edge_index, n):
    src, dst = edge_index[0], edge_index[1]
    a = jnp.zeros((n, n), jnp.float32).at[dst, src].set(1.0)
    a = a + jnp.eye(n, dtype=jnp.float32)            # add self loops
    deg = jnp.sum(a, axis=1)
    dinv = jnp.where(deg > 0, 1.0 / jnp.sqrt(deg), 0.0)
    return dinv[:, None] * a * dinv[None, :]


# ----------------------------------------------------------------------------
# Wrapper: batch of B graphs sharing one topology, fused in one pallas_call
# ----------------------------------------------------------------------------
def graph_nca_forward_batched(x, edge_index, params, *, use_bf16=True):
    """x: [B, N, C] (or [N, C] for a single graph), edge_index: [2, E] int32."""
    single = x.ndim == 2
    if single:
        x = x[None]
    B, N, C = x.shape
    wg, w1, b1, w2, b2 = params
    H = w1.shape[1]

    adj = _build_adj_norm(edge_index, N)

    # Offline weight fusion: no nonlinearity between GCN linear and the first
    # update_net Linear, so fold them:  Wc = Wg @ W1  ([C, H]).
    wc = jnp.dot(wg, w1)                             # f32 fusion

    # Pad N to a multiple of 8 (f32 sublane tile); pad B so each grid step
    # handles a lane-dense pack of BP graphs (BP*C is a multiple of 128).
    n_pad = ((N + _SUBLANE - 1) // _SUBLANE) * _SUBLANE
    bp = _LANE // math.gcd(_LANE, C)                 # graphs packed per grid step
    g = pl.cdiv(B, bp)                               # grid size (parallel axis)
    b_tot = g * bp
    cb = bp * C                                      # packed lane width per step

    adj_p = jnp.zeros((n_pad, n_pad), jnp.float32).at[:N, :N].set(adj)
    x_p = jnp.zeros((b_tot, n_pad, C), jnp.float32).at[:B, :N, :].set(x)
    # pack: [B, Np, C] -> [Np, B*C]  (batch-major on the lane axis)
    x_packed = jnp.transpose(x_p, (1, 0, 2)).reshape(n_pad, b_tot * C)

    # Block-diagonal weights: one lane-dense matmul applies the per-graph layer
    # independently to every packed graph (no in-kernel reshapes needed).
    eye = jnp.eye(bp, dtype=jnp.float32)
    wc_big = jnp.kron(eye, wc)                       # [bp*C, bp*H]
    w2_big = jnp.kron(eye, w2)                       # [bp*H, bp*C]
    b1_big = jnp.tile(b1, bp).reshape(1, bp * H)     # f32
    b2_big = jnp.tile(b2, bp).reshape(1, bp * C)     # f32

    mm_dtype = jnp.bfloat16 if use_bf16 else jnp.float32
    adj_p = adj_p.astype(mm_dtype)
    wc_big = wc_big.astype(mm_dtype)
    w2_big = w2_big.astype(mm_dtype)

    full = lambda shape: pl.BlockSpec(shape, lambda i: (0,) * len(shape))

    out_packed = pl.pallas_call(
        gnca_kernel,
        out_shape=jax.ShapeDtypeStruct((n_pad, b_tot * C), jnp.float32),
        grid=(g,),
        in_specs=[
            full(adj_p.shape),                                   # shared adjacency
            pl.BlockSpec((n_pad, cb), lambda i: (0, i)),         # packed features
            full(wc_big.shape),
            full(b1_big.shape),
            full(w2_big.shape),
            full(b2_big.shape),
        ],
        out_specs=pl.BlockSpec((n_pad, cb), lambda i: (0, i)),
        compiler_params=pltpu.CompilerParams(
            dimension_semantics=("parallel",)),                  # megacore / v7x 2 TCs
    )(adj_p, x_packed, wc_big, b1_big, w2_big, b2_big)

    out = out_packed.reshape(n_pad, b_tot, C).transpose(1, 0, 2)[:B, :N, :]
    return out[0] if single else out


def graph_nca_forward(x, edge_index, params, *, use_bf16=True):
    """Single-graph forward, matching GraphNCA.forward(x, edge_index, _)."""
    return graph_nca_forward_batched(x, edge_index, params, use_bf16=use_bf16)


# ----------------------------------------------------------------------------
# Pure-JAX references
# ----------------------------------------------------------------------------
def graph_nca_forward_ref_f32(x, edge_index, params):
    """Full f32, original association adj @ (x @ Wg) — the module semantics."""
    single = x.ndim == 2
    if single:
        x = x[None]
    wg, w1, b1, w2, b2 = params
    adj = _build_adj_norm(edge_index, x.shape[1])
    xw = jnp.einsum("bnc,ck->bnk", x, wg)
    feats = jnp.einsum("mn,bnk->bmk", adj, xw)
    h = jnp.maximum(jnp.einsum("bnk,kh->bnh", feats, w1) + b1, 0.0)
    upd = jnp.einsum("bnh,hc->bnc", h, w2) + b2
    out = x + upd
    return out[0] if single else out


def graph_nca_forward_ref_matched(x, edge_index, params, mm_dtype=jnp.bfloat16):
    """Mimics the kernel's fusion (Wc = Wg@W1) and precision (bf16 matmul
    operands, f32 accumulation) so the tight tolerance check is meaningful."""
    single = x.ndim == 2
    if single:
        x = x[None]
    wg, w1, b1, w2, b2 = params
    wc = jnp.dot(wg, w1)                              # f32 fusion, as in wrapper
    adj = _build_adj_norm(edge_index, x.shape[1]).astype(mm_dtype)
    agg = jnp.einsum("mn,bnc->bmc", adj, x.astype(mm_dtype),
                     preferred_element_type=jnp.float32)
    h = jnp.einsum("bnc,ch->bnh", agg.astype(mm_dtype), wc.astype(mm_dtype),
                   preferred_element_type=jnp.float32) + b1
    h = jnp.maximum(h, 0.0)
    upd = jnp.einsum("bnh,hc->bnc", h.astype(mm_dtype), w2.astype(mm_dtype),
                     preferred_element_type=jnp.float32) + b2
    out = x + upd
    return out[0] if single else out


if __name__ == "__main__":
    key = jax.random.PRNGKey(0)

    N = 8          # graph nodes
    C = 16         # num_hidden_channels -> num_channels
    HID = 32       # update_net hidden width
    B = 16         # batch of graphs sharing topology -> 2 lane-packed groups, grid=(2,)

    k0, k1, k2, k3, k4, kx = jax.random.split(key, 6)

    # Deterministic synthetic parameters (shapes match the PyTorch module).
    wg = jax.random.normal(k0, (C, 3 * C), jnp.float32) * 0.1    # GCNConv lin [in, out]
    w1 = jax.random.normal(k1, (3 * C, HID), jnp.float32) * 0.1  # Linear(3C, 32)
    b1 = jax.random.normal(k2, (HID,), jnp.float32) * 0.1
    w2 = jax.random.normal(k3, (HID, C), jnp.float32) * 0.1      # Linear(32, C)
    b2 = jax.random.normal(k4, (C,), jnp.float32) * 0.1
    params = (wg, w1, b1, w2, b2)

    # Batch of node-feature matrices and a bidirectional ring graph (E = 2N).
    xb = jax.random.normal(kx, (B, N, C), jnp.float32)
    fwd = jnp.arange(N, dtype=jnp.int32)
    nxt = (fwd + 1) % N
    edge_index = jnp.stack(
        [jnp.concatenate([fwd, nxt]), jnp.concatenate([nxt, fwd])], axis=0
    )  # [2, 2N]

    # Batched fused forward (one pallas_call for all B graphs).
    out_b = jax.block_until_ready(graph_nca_forward_batched(xb, edge_index, params))
    assert out_b.shape == (B, N, C)

    ref_match = graph_nca_forward_ref_matched(xb, edge_index, params)
    ref_f32 = graph_nca_forward_ref_f32(xb, edge_index, params)
    assert jnp.allclose(out_b, ref_match, atol=1e-4, rtol=1e-3), (
        float(jnp.max(jnp.abs(out_b - ref_match))))
    assert jnp.allclose(out_b, ref_f32, atol=5e-2, rtol=5e-2), (
        float(jnp.max(jnp.abs(out_b - ref_f32))))

    # Single-graph path (== GraphNCA.forward on one graph).
    out1 = jax.block_until_ready(graph_nca_forward(xb[0], edge_index, params))
    assert out1.shape == (N, C)
    assert jnp.allclose(out1, ref_match[0], atol=1e-4, rtol=1e-3)

    print("KERNEL_OK")
</pallas_src>

<mosaic_0001>
module attributes {stable_mosaic.version = 11 : i64} {
  func.func @gnca_kernel(%arg0: i32, %arg1: memref<8x8xbf16, #tpu.memory_space<vmem>>, %arg2: memref<8x128xf32, #tpu.memory_space<vmem>>, %arg3: memref<128x256xbf16, #tpu.memory_space<vmem>>, %arg4: memref<1x256xf32, #tpu.memory_space<vmem>>, %arg5: memref<256x128xbf16, #tpu.memory_space<vmem>>, %arg6: memref<1x128xf32, #tpu.memory_space<vmem>>, %arg7: memref<8x128xf32, #tpu.memory_space<vmem>>) attributes {dimension_semantics = [#tpu.dimension_semantics<parallel>], iteration_bounds = array<i64: 2>, scalar_prefetch = 0 : i64, scratch_operands = 0 : i64, tpu.core_type = #tpu.core_type<tc>, window_params = [{pipeline_mode = #tpu.pipeline_mode<synchronous>, transform_indices = @transform_0, window_bounds = array<i64: 8, 8>}, {transform_indices = @transform_1, window_bounds = array<i64: 8, 128>}, {pipeline_mode = #tpu.pipeline_mode<synchronous>, transform_indices = @transform_2, window_bounds = array<i64: 128, 256>}, {pipeline_mode = #tpu.pipeline_mode<synchronous>, transform_indices = @transform_3, window_bounds = array<i64: 1, 256>}, {pipeline_mode = #tpu.pipeline_mode<synchronous>, transform_indices = @transform_4, window_bounds = array<i64: 256, 128>}, {pipeline_mode = #tpu.pipeline_mode<synchronous>, transform_indices = @transform_5, window_bounds = array<i64: 1, 128>}, {transform_indices = @transform_6, window_bounds = array<i64: 8, 128>}]} {
    %c0 = arith.constant 0 : index
    %c0_0 = arith.constant 0 : index
    %0 = vector.load %arg2[%c0, %c0_0] : memref<8x128xf32, #tpu.memory_space<vmem>>, vector<8x128xf32>
    %c0_1 = arith.constant 0 : index
    %c0_2 = arith.constant 0 : index
    %1 = vector.load %arg1[%c0_1, %c0_2] : memref<8x8xbf16, #tpu.memory_space<vmem>>, vector<8x8xbf16>
    %2 = arith.truncf %0 : vector<8x128xf32> to vector<8x128xbf16>
    %cst = arith.constant dense<0.000000e+00> : vector<8x128xf32>
    %3 = tpu.matmul %1, %2, %cst {dimension_numbers = #tpu.dot_dimension_numbers<[1], [0], [0], [1], [0, 0, 1, 1], [], []>} : vector<8x8xbf16>, vector<8x128xbf16>, vector<8x128xf32> -> vector<8x128xf32>
    %4 = arith.truncf %3 : vector<8x128xf32> to vector<8x128xbf16>
    %c0_3 = arith.constant 0 : index
    %c0_4 = arith.constant 0 : index
    %5 = vector.load %arg3[%c0_3, %c0_4] : memref<128x256xbf16, #tpu.memory_space<vmem>>, vector<128x256xbf16>
    %cst_5 = arith.constant dense<0.000000e+00> : vector<8x256xf32>
    %6 = tpu.matmul %4, %5, %cst_5 {dimension_numbers = #tpu.dot_dimension_numbers<[1], [0], [0], [1], [0, 0, 1, 1], [], []>} : vector<8x128xbf16>, vector<128x256xbf16>, vector<8x256xf32> -> vector<8x256xf32>
    %c0_6 = arith.constant 0 : index
    %c0_7 = arith.constant 0 : index
    %7 = vector.load %arg4[%c0_6, %c0_7] : memref<1x256xf32, #tpu.memory_space<vmem>>, vector<1x256xf32>
    %8 = vector.broadcast %7 : vector<1x256xf32> to vector<8x256xf32>
    %9 = arith.addf %6, %8 : vector<8x256xf32>
    %cst_8 = arith.constant 0.000000e+00 : f32
    %10 = vector.broadcast %cst_8 : f32 to vector<8x256xf32>
    %11 = arith.maximumf %9, %10 : vector<8x256xf32>
    %12 = arith.truncf %11 : vector<8x256xf32> to vector<8x256xbf16>
    %c0_9 = arith.constant 0 : index
    %c0_10 = arith.constant 0 : index
    %13 = vector.load %arg5[%c0_9, %c0_10] : memref<256x128xbf16, #tpu.memory_space<vmem>>, vector<256x128xbf16>
    %cst_11 = arith.constant dense<0.000000e+00> : vector<8x128xf32>
    %14 = tpu.matmul %12, %13, %cst_11 {dimension_numbers = #tpu.dot_dimension_numbers<[1], [0], [0], [1], [0, 0, 1, 1], [], []>} : vector<8x256xbf16>, vector<256x128xbf16>, vector<8x128xf32> -> vector<8x128xf32>
    %c0_12 = arith.constant 0 : index
    %c0_13 = arith.constant 0 : index
    %15 = vector.load %arg6[%c0_12, %c0_13] : memref<1x128xf32, #tpu.memory_space<vmem>>, vector<1x128xf32>
    %16 = vector.broadcast %15 : vector<1x128xf32> to vector<8x128xf32>
    %17 = arith.addf %14, %16 : vector<8x128xf32>
    %18 = arith.addf %0, %17 : vector<8x128xf32>
    %c0_14 = arith.constant 0 : index
    %c0_15 = arith.constant 0 : index
    %19 = vector.load %arg7[%c0_14, %c0_15] : memref<8x128xf32, #tpu.memory_space<vmem>>, vector<8x128xf32>
    tpu.vector_store %arg7[%c0_14, %c0_15], %18 {strides = array<i32>} : memref<8x128xf32, #tpu.memory_space<vmem>>, vector<8x128xf32>,
    return
  }
  func.func @transform_0(%arg0: i32) -> (i32, i32) {
    %c0_i32 = arith.constant 0 : i32
    %c0_i32_0 = arith.constant 0 : i32
    %c0_i32_1 = arith.constant 0 : i32
    return %c0_i32, %c0_i32_0 : i32, i32
  }
  func.func @transform_1(%arg0: i32) -> (i32, i32) {
    %c0_i32 = arith.constant 0 : i32
    %c0_i32_0 = arith.constant 0 : i32
    return %c0_i32, %arg0 : i32, i32
  }
  func.func @transform_2(%arg0: i32) -> (i32, i32) {
    %c0_i32 = arith.constant 0 : i32
    %c0_i32_0 = arith.constant 0 : i32
    %c0_i32_1 = arith.constant 0 : i32
    return %c0_i32, %c0_i32_0 : i32, i32
  }
  func.func @transform_3(%arg0: i32) -> (i32, i32) {
    %c0_i32 = arith.constant 0 : i32
    %c0_i32_0 = arith.constant 0 : i32
    %c0_i32_1 = arith.constant 0 : i32
    return %c0_i32, %c0_i32_0 : i32, i32
  }
  func.func @transform_4(%arg0: i32) -> (i32, i32) {
    %c0_i32 = arith.constant 0 : i32
    %c0_i32_0 = arith.constant 0 : i32
    %c0_i32_1 = arith.constant 0 : i32
    return %c0_i32, %c0_i32_0 : i32, i32
  }
  func.func @transform_5(%arg0: i32) -> (i32, i32) {
    %c0_i32 = arith.constant 0 : i32
    %c0_i32_0 = arith.constant 0 : i32
    %c0_i32_1 = arith.constant 0 : i32
    return %c0_i32, %c0_i32_0 : i32, i32
  }
  func.func @transform_6(%arg0: i32) -> (i32, i32) {
    %c0_i32 = arith.constant 0 : i32
    %c0_i32_0 = arith.constant 0 : i32
    return %c0_i32, %arg0 : i32, i32
  }
}

</mosaic_0001>

<bundles_post_ra>
// kernel: tpu_custom_call.1
= control target key start
LH: loop header
LB: loop body
LE: loop exit
PB: predicated region body
PF: predicated region fallthrough
CT: control target
= control target key end

     0   :  { %11 = vsyncpa [#allocation3], 0  ;;  %s1528_s0 = inlined_call_operand.hbm [shape: bf16[8,8], index: 0, kind: input, shape index: {}]   ;;  %s1529_s1 = inlined_call_operand.hbm [shape: f32[8,256], index: 1, kind: input, shape index: {}]   ;;  %s1530_s2 = inlined_call_operand.hbm [shape: bf16[128,256], index: 2, kind: input, shape index: {}]   ;;  %s1531_s3 = inlined_call_operand.vmem [shape: f32[1,256], index: 3, kind: input, shape index: {}]   ;;  %s1532_s4 = inlined_call_operand.hbm [shape: bf16[256,128], index: 4, kind: input, shape index: {}]   ;;  %s1533_s5 = inlined_call_operand.vmem [shape: f32[1,128], index: 5, kind: input, shape index: {}]   ;;  %s1534_s6 = inlined_call_operand.hbm [shape: f32[8,256], index: 6, kind: output, shape index: {}]  }
   0x1   :  { %12 = vsyncpa [#allocation6], 0 }
   0x2   :  { %14 = vsyncpa [#allocation6 + $0x1], 0 }
   0x3   :  { %15 = vsyncpa [#allocation9], 0 }
   0x4   :  { %16 = vsyncpa [#allocation4], 0 }
   0x5   :  { %18 = vsyncpa [#allocation4 + $0x1], 0  ;;  %s1254_s21 = smov 0   ;;  %s1256_s22 = smov 0  }
   0x6   :  { %s1258_s23 = smov 0   ;;  %s1260_s24 = smov 0  }
   0x7 LB: > { %s1275_s25 = sadd.s32 4294967295, %s1205_s24   ;;  %s807_s26 = sadd.s32 4294967294, %s1205_s24   ;;  %s1205_s24 = sphi %s1260_s24, %s1559_s24   ;;  %s1201_s23 = sphi %s1258_s23, %s1558_s23   ;;  %s1197_s22 = sphi %s1256_s22, %s1557_s22   ;;  %s1193_s21 = sphi %s1254_s21, %s1556_s21  }
   0x8   : > { %p65_p0 = scmp.ne.s32.totalorder %s1197_s22, %s1193_s21  ;;  %p1535_p1 = scmp.eq.s32.totalorder %s1275_s25, 0 }
   0x9   : > { %p179_p3 = scmp.eq.s32.totalorder %s807_s26, 1  ;;  %p808_p5 = scmp.ge.s32.totalorder %s1205_s24, 1 }
   0xa   : > { %p1284_p4 = por %p1535_p1, %p65_p0  ;;  %p186_p7 = scmp.lt.s32.totalorder %s1205_s24, 3 }
   0xb   : > { %p1289_p6 = por %p179_p3, %p65_p0  ;;  %s1207_s30 = smov [#allocation7]  }
   0xc   : > { %s1538_s27 = scalar_select %p1284_p4, 1, 0 }
   0xd   : > { %s1539_s28 = scalar_select %p1289_p6, 1, 0 }
   0xe   : > { %p1294_p8 = pnand %p808_p5, %p186_p7  ;;  %s209_s7 = sshll.u32 %s1207_s30, 4  ;;  %s1298_s7 = int_to_ptr.vmem [resolvable:$true] %s209_s7 }
   0xf   : > { %s1208_s9 = smov [#allocation2]   ;;  %s1209_s11 = smov [#allocation8]  }
  0x10   : > { %s1540_s29 = scalar_select %p1294_p8, 1, 0 }
  0x11   : > { %p905_p9 = pneg %p1294_p8  ;;  %s199_s10 = sshll.u32 %s1208_s9, 4  ;;  %s1309_s10 = int_to_ptr.vmem [resolvable:$true] %s199_s10 }
  0x12   : > { %s1311_s12 = sshll.u32 %s1209_s11, 4  ;;  %s1013_s15 = scalar_lea.hbm %s1530_s2, 2048  ;;  %s226_s12 = int_to_ptr.vmem [resolvable:$true] %s1311_s12 }
  0x13   : > { %p1305_p11 = pnand %p905_p9, %p1535_p1  ;;  %p1014_p12 = scmp.ne.s32.totalorder %s1530_s2, %s1013_s15 }
  0x14   : > { %p1020_p5 = scmp.lt.u32.totalorder %s1013_s15, %s1530_s2 }
  0x15   : > { %p1321_p13 = pneg %p1305_p11 }
  0x17   : > { %p1016_p0 = pnand %p1321_p13, %p1014_p12 }
  0x19   : > { %p1017_p3 = pneg %p1016_p0 }
  0x1b   : > { %p1022_p7 = pnand %p1020_p5, %p1017_p3 }
  0x1d   : > { %1025 = shalt.err (!%p1022_p7)
}
  0x1e   : > { %s1026_s26 = scalar_lea.vmem %s1298_s7, 2048  ;;  %p1034_p2 = scmp.lt.s32.totalorder %s1298_s7, %s1298_s7 }
  0x1f   : > { %p1027_p9 = scmp.ne.s32.totalorder %s1298_s7, %s1026_s26  ;;  %p1035_p6 = scmp.lt.s32.totalorder %s1026_s26, %s1026_s26 }
  0x21   : > { %p1029_p10 = pnand %p1027_p9, %p1321_p13  ;;  %p1036_p12 = por %p1035_p6, %p1034_p2 }
  0x23   : > { %p1030_p1 = pneg %p1029_p10 }
  0x25   : > { %p1037_p0 = pnand %p1036_p12, %p1030_p1 }
  0x27   : > { %1040 = shalt.err (!%p1037_p0)
}
  0x28   : > { %s1210_s30 = smov 128   ;;  %s1211_s9 = smov 8  }
  0x29   : > { %911 = dma.hbm_to_vmem [thread:$0]  (!%p1305_p11), %s1530_s2, 2048, %s1298_s7, [#allocation6], %s1210_s30, %s1210_s30, %s1211_s9  }
  0x2a   : > { %s1041_s16 = scalar_lea.hbm %s1528_s0, 64 }
  0x2b   : > { %p1042_p2 = scmp.ne.s32.totalorder %s1528_s0, %s1041_s16  ;;  %p1048_p10 = scmp.lt.u32.totalorder %s1041_s16, %s1528_s0 }
  0x2d   : > { %p1044_p1 = pnand %p1042_p2, %p1321_p13 }
  0x2f   : > { %p1045_p6 = pneg %p1044_p1 }
  0x31   : > { %p1050_p3 = pnand %p1048_p10, %p1045_p6 }
  0x33   : > { %1053 = shalt.err (!%p1050_p3)
}
  0x34   : > { %s1054_s7 = scalar_lea.vmem %s1309_s10, 64  ;;  %p1062_p12 = scmp.lt.s32.totalorder %s1309_s10, %s1309_s10 }
  0x35   : > { %p1055_p5 = scmp.ne.s32.totalorder %s1309_s10, %s1054_s7  ;;  %p1063_p0 = scmp.lt.s32.totalorder %s1054_s7, %s1054_s7 }
  0x37   : > { %p1057_p7 = pnand %p1055_p5, %p1321_p13  ;;  %p1064_p2 = por %p1063_p0, %p1062_p12 }
  0x39   : > { %p1058_p9 = pneg %p1057_p7 }
  0x3b   : > { %p1065_p1 = pnand %p1064_p2, %p1058_p9 }
  0x3d   : > { %1068 = shalt.err (!%p1065_p1)
}
  0x3e   : > { %908 = dma.hbm_to_vmem [thread:$0]  (!%p1305_p11), %s1528_s0, 64, %s1309_s10, [#allocation3]  }
  0x3f   : > { %s1069_s14 = scalar_lea.hbm %s1532_s4, 2048 }
  0x40   : > { %p1070_p6 = scmp.ne.s32.totalorder %s1532_s4, %s1069_s14  ;;  %p1076_p5 = scmp.lt.u32.totalorder %s1069_s14, %s1532_s4 }
  0x42   : > { %p1072_p10 = pnand %p1070_p6, %p1321_p13 }
  0x44   : > { %p1073_p3 = pneg %p1072_p10 }
  0x46   : > { %p1078_p7 = pnand %p1076_p5, %p1073_p3 }
  0x48   : > { %1081 = shalt.err (!%p1078_p7)
}
  0x49   : > { %s1082_s20 = scalar_lea.vmem %s226_s12, 2048  ;;  %p1090_p2 = scmp.lt.s32.totalorder %s226_s12, %s226_s12 }
  0x4a   : > { %p1083_p9 = scmp.ne.s32.totalorder %s226_s12, %s1082_s20  ;;  %p1091_p1 = scmp.lt.s32.totalorder %s1082_s20, %s1082_s20 }
  0x4c   : > { %p1085_p12 = pnand %p1083_p9, %p1321_p13  ;;  %p1092_p4 = por %p1091_p1, %p1090_p2 }
  0x4e   : > { %p1086_p0 = pneg %p1085_p12 }
  0x50   : > { %p1093_p8 = pnand %p1092_p4, %p1086_p0 }
  0x52   : > { %1096 = shalt.err (!%p1093_p8)
}
  0x53   : > { %s1212_s10 = smov 64   ;;  %s1213_s18 = smov 4  }
  0x54   : > { %914 = dma.hbm_to_vmem [thread:$0]  (!%p1305_p11), %s1532_s4, 2048, %s226_s12, [#allocation9], %s1212_s10, %s1212_s10, %s1213_s18  }
  0x55   : > { %s1385_s30 = sadd.s32 1, %s1205_s24   ;;  %s52_s11 = sadd.s32 1, %s1201_s23 }
  0x56   : > { %s49_s9 = ssub.s32 %s1205_s24, %s1385_s30  ;;  %p59_p8 = scmp.ne.s32.totalorder %s1201_s23, %s1197_s22 }
  0x57   : > { %p50_p4 = scmp.eq.s32.totalorder %s49_s9, 0  ;;  %p60_p13 = scmp.eq.s32.totalorder %s1205_s24, 0 }
  0x58   : > { %p926_p6 = scmp.lt.s32.totalorder %s1205_s24, 2  ;;  %p1543_p3 = scmp.eq.s32.totalorder %s1275_s25, 1 }
  0x59   : > { %s1395_s13 = scalar_select %p50_p4, %s1201_s23, %s52_s11  }
  0x5a   : > { %p61_p10 = por %p60_p13, %p59_p8  ;;  %p1399_p5 = por %p1543_p3, %p59_p8 }
  0x5b   : > { %s242_s8 = sand.u32 1, %s1205_s24   ;;  %s244_s15 = sand.u32 1, %s1201_s23  }
  0x5c   : > { %s813_s12 = sshll.u32 %s244_s15, 3  ;;  %s814_s16 = sshll.u32 %s1205_s24, 7 }
  0x5d   : > { %s1409_s20 = scalar_lea.hbm %s1529_s1, %s814_s16  ;;  %s246_s10 = scalar_lea.vmem [#allocation5], %s813_s12 }
  0x5e   : > { %s253_s18 = sshll.u32 %s246_s10, 4  ;;  %p1413_p11 = pnand %p926_p6, %p61_p10  ;;  %s1411_s18 = int_to_ptr.vmem [resolvable:$true] %s253_s18 }
  0x5f   : > { %s243_s7 = scalar_lea.sflag [#allocation6], %s242_s8  ;;  %s1097_s9 = scalar_lea.hbm %s1409_s20, 128 }
  0x60   : > { %p1098_p7 = scmp.ne.s32.totalorder %s1409_s20, %s1097_s9  ;;  %p1099_p9 = pneg %p1413_p11 }
  0x61   : > { %s1102_s12 = scalar_lea.hbm %s1529_s1, 256  ;;  %p1103_p2 = scmp.lt.u32.totalorder %s1409_s20, %s1529_s1 }
  0x62   : > { %p1100_p12 = pnand %p1099_p9, %p1098_p7  ;;  %p1104_p1 = scmp.lt.u32.totalorder %s1102_s12, %s1097_s9 }
  0x63   : > { %p1106_p8 = scmp.lt.u32.totalorder %s1097_s9, %s1409_s20 }
  0x64   : > { %p1101_p0 = pneg %p1100_p12  ;;  %p1105_p4 = por %p1104_p1, %p1103_p2 }
  0x66   : > { %p1107_p13 = por %p1106_p8, %p1105_p4 }
  0x68   : > { %p1108_p6 = pnand %p1107_p13, %p1101_p0 }
  0x6a   : > { %1111 = shalt.err (!%p1108_p6)
}
  0x6b   : > { %s1112_s8 = scalar_lea.vmem %s1411_s18, 128  ;;  %s1214_s19 = smov [#allocation5]  }
  0x6c   : > { %p1113_p10 = scmp.ne.s32.totalorder %s1411_s18, %s1112_s8  ;;  %s1117_s10 = sshll.u32 %s1214_s19, 4  ;;  %s1118_s10 = int_to_ptr.vmem [resolvable:$false] %s1117_s10 }
  0x6d   : > { %s1119_s11 = scalar_lea.vmem %s1118_s10, 256  ;;  %p1120_p12 = scmp.lt.s32.totalorder %s1411_s18, %s1118_s10 }
  0x6e   : > { %p1115_p3 = pnand %p1113_p10, %p1099_p9  ;;  %p1121_p2 = scmp.lt.s32.totalorder %s1119_s11, %s1112_s8 }
  0x70   : > { %p1116_p7 = pneg %p1115_p3  ;;  %p1122_p1 = por %p1121_p2, %p1120_p12 }
  0x72   : > { %p1123_p4 = pnand %p1122_p1, %p1116_p7 }
  0x74   : > { %1126 = shalt.err (!%p1123_p4)
}
  0x75   : > { %918 = dma.hbm_to_vmem [thread:$0]  (!%p1413_p11), %s1409_s20, 128, %s1411_s18, %s243_s7  }
  0x76   : > { %p1546_p0 = scmp.ne.s32.totalorder %s1540_s29, 0 }
  0x77   : > { %p1547_p9 = scmp.eq.s32.totalorder (!%p1546_p0), %s1275_s25, 0 }
  0x78   : > { %262 = sbr.rel (%p1546_p0) target bundleno = 813 (0x32d), region = 44 }
  0x7f   : > { %1172 = dma.done.wait (%p1547_p9), [#allocation3], 64   ;;  %p1548_p8 = pmov %p1547_p9 }
  0x80   : > { %s268_s9 = sand.u32 1, %s1275_s25   ;;  %s270_s15 = sand.u32 1, %s1197_s22  }
  0x81   : > { %1174 = vsyncadd (%p1548_p8), [#allocation3], 4294967232  ;;  %s1452_s26 = sshll.u32 %s270_s15, 3  ;;  %s269_s20 = scalar_lea.sflag [#allocation6], %s268_s9 }
  0x82   : > { %s272_s18 = scalar_lea.vmem [#allocation5], %s1452_s26  ;;  %p1549_p11 = scmp.ne.s32.totalorder %s1538_s27, 0 }
  0x84   : > { %1176 = dma.done.wait (%p1549_p11), %s269_s20, 128  }
  0x85   : > { %1178 = vsyncadd (%p1549_p11), %s269_s20, 4294967168  ;;  %p1550_p13 = pmov %p1548_p8 }
  0x86   : > { %p1551_p6 = pmov %p1548_p8 }
  0x87   : > { %1180 = dma.done.wait (%p1550_p13), [#allocation6], 2048  }
  0x88   : > { %1182 = vsyncadd (%p1551_p6), [#allocation6], 4294965248  ;;  %p1552_p10 = pmov %p1551_p6 }
  0x89   : > { %p1553_p3 = pmov %p1551_p6 }
  0x8a   : > { %1184 = dma.done.wait (%p1552_p10), [#allocation9], 2048  }
  0x8b   : > { %1186 = vsyncadd (%p1553_p3), [#allocation9], 4294965248  ;;  %v1215_v0 = vmov 0.0   ;;  %vm1216_vm0 = vmmov 0   ;;  %v1467_v1 = vld [vmem:[%s272_s18] sm:$0xff]  ;;  %vm317_vm1 = vcmask 1043456   ;;  %v380_v43 = vlaneseq }
  0x8c   : > { %883 = vmatprep.subr.bf16.mxu0 %v1215_v0  ;;  %885 = vmatprep.mubr.msk.bf16.mxu0 %vm1216_vm0, %v1215_v0  ;;  %v312_v2 = vpack.c.bf16 %v1467_v1, %v1467_v1  ;;  %v973_v3 = vld [vmem:[#allocation7 + $0x4] ss:$8 sps:$4 sm:$0xff]   ;;  %v975_v4 = vld [vmem:[#allocation7] ss:$8 sps:$4 sm:$0xff]   ;;  %v976_v5 = vld [vmem:[#allocation7 + $0x14] ss:$8 sps:$4 sm:$0xff]  }
  0x8d   : > { %470 = vmatprep.subr.bf16.mxu1 %v973_v3  ;;  %v311_v7 = vld [vmem:[#allocation2] sm:$0xf]  ;;  %vm313_vm2 = vcmask 64512   ;;  %v978_v8 = vld [vmem:[#allocation7 + $0x10] ss:$8 sps:$4 sm:$0xff]   ;;  %v1217_v21 = vmov 0  }
  0x8e   : > { %v319_v6 = vsel %vm317_vm1, %v312_v2, 0  ;;  %471 = vmatpush1.bf16.msra.mxu1 %v975_v4  ;;  %v979_v9 = vld [vmem:[#allocation7 + $0x24] ss:$8 sps:$4 sm:$0xff]   ;;  %v981_v10 = vld [vmem:[#allocation7 + $0x20] ss:$8 sps:$4 sm:$0xff]   ;;  %502 = vmatprep.mubr.bf16.mxu1 %v1217_v21  ;;  %v1001_v26 = vld [vmem:[#allocation8 + $0x50] sm:$0xff]  }
  0x8f   : > { %884 = vmatpush3.bf16.msra.mxu0 %v319_v6  ;;  %472 = vmatprep.subr.bf16.mxu1 %v976_v5  ;;  %v982_v11 = vld [vmem:[#allocation7 + $0x34] ss:$8 sps:$4 sm:$0xff]   ;;  %v984_v12 = vld [vmem:[#allocation7 + $0x30] ss:$8 sps:$4 sm:$0xff]   ;;  %v985_v13 = vld [vmem:[#allocation7 + $0x44] ss:$8 sps:$4 sm:$0xff]  }
  0x90   : > { %v987_v14 = vld [vmem:[#allocation7 + $0x40] ss:$8 sps:$4 sm:$0xff]   ;;  %v988_v15 = vld [vmem:[#allocation7 + $0x54] ss:$8 sps:$4 sm:$0xff]   ;;  %v990_v16 = vld [vmem:[#allocation7 + $0x50] ss:$8 sps:$4 sm:$0xff]  }
  0x91   : > { %v991_v17 = vld [vmem:[#allocation7 + $0x64] ss:$8 sps:$4 sm:$0xff]   ;;  %v993_v18 = vld [vmem:[#allocation7 + $0x60] ss:$8 sps:$4 sm:$0xff]   ;;  %v994_v19 = vld [vmem:[#allocation7 + $0x74] ss:$8 sps:$4 sm:$0xff]  }
  0x92   : > { %886 = vmatmul.mubr.msk.bf16.vlgmr.msra.gmra.mrb[0].mxu0 %vm313_vm2, %v311_v7  ;;  %473 = vmatpush1.bf16.msra.mxu1 %v978_v8  ;;  %v996_v20 = vld [vmem:[#allocation7 + $0x70] ss:$8 sps:$4 sm:$0xff]   ;;  %v997_v22 = vld [vmem:[#allocation8 + $0x40] sm:$0xff]   ;;  %v999_v24 = vld [vmem:[#allocation8 + $0x48] sm:$0xff]   ;;  %v381_v44 = vshrl.u32 %v380_v43, 7  ;;  %s856_s16 = sshll.u32 %s1275_s25, 7 }
  0x93   : > { %474 = vmatprep.subr.bf16.mxu1 %v979_v9  ;;  %v998_v23 = vld [vmem:[#allocation8] sm:$0xff]   ;;  %861 = vmatprep.subr.bf16.mxu0 %v997_v22  ;;  %v1000_v25 = vld [vmem:[#allocation8 + $0x8] sm:$0xff]   ;;  %v1002_v27 = vld [vmem:[#allocation8 + $0x10] sm:$0xff]   ;;  %s308_s17 = scalar_lea.vmem [#allocation10], %s1452_s26  ;;  %s1483_s11 = scalar_lea.hbm %s1534_s6, %s856_s16 }
  0x94   : > { %862 = vmatpush3.bf16.msra.mxu0 %v998_v23  ;;  %v1003_v28 = vld [vmem:[#allocation8 + $0x58] sm:$0xff]   ;;  %v1005_v30 = vld [vmem:[#allocation8 + $0x60] sm:$0xff]   ;;  %v1007_v32 = vld [vmem:[#allocation8 + $0x68] sm:$0xff]   ;;  %v382_v45 = vsub.s32 0, %v381_v44  ;;  %v386_v47 = vsub.s32 1, %v381_v44  ;;  %s706_s8 = sshll.u32 %s308_s17, 4  ;;  %s1485_s8 = int_to_ptr.vmem [resolvable:$true] %s706_s8 }
  0x95   : > { %863 = vmatprep.subr.bf16.mxu0 %v999_v24  ;;  %v1004_v29 = vld [vmem:[#allocation8 + $0x18] sm:$0xff]   ;;  %v1006_v31 = vld [vmem:[#allocation8 + $0x20] sm:$0xff]   ;;  %v1008_v33 = vld [vmem:[#allocation8 + $0x28] sm:$0xff]   ;;  %s693_s9 = scalar_lea.sflag [#allocation4], %s270_s15  ;;  %s1127_s20 = scalar_lea.vmem %s1485_s8, 128 }
  0x96   : > { %475 = vmatpush1.bf16.msra.mxu1 %v981_v10  ;;  %v1009_v39 = vld [vmem:[#allocation8 + $0x70] sm:$0xff]   ;;  %v1011_v41 = vld [vmem:[#allocation8 + $0x78] sm:$0xff]   ;;  %v378_v46 = vld [vmem:[%s1531_s3] sm:$0x3]  ;;  %p1128_p7 = scmp.ne.s32.totalorder %s1485_s8, %s1127_s20  ;;  %s1218_s25 = smov [#allocation10]  }
  0x97   : > { %476 = vmatprep.subr.bf16.mxu1 %v982_v11  ;;  %v1010_v40 = vld [vmem:[#allocation8 + $0x30] sm:$0xff]   ;;  %v1012_v42 = vld [vmem:[#allocation8 + $0x38] sm:$0xff]   ;;  %v383_v48 = vrot.slane %v378_v46, %v382_v45  ;;  %v387_v49 = vrot.slane %v378_v46, %v386_v47  ;;  %v838_v61 = vld [vmem:[%s1533_s5] ss:$0 sm:$0xff]  ;;  %s1131_s26 = sshll.u32 %s1218_s25, 4  ;;  %s1132_s26 = int_to_ptr.vmem [resolvable:$false] %s1131_s26 }
  0x98   : > { %864 = vmatpush3.bf16.msra.mxu0 %v1000_v25  ;;  %p1129_p12 = pnand %p1128_p7, %p1399_p5  ;;  %s1133_s18 = scalar_lea.vmem %s1132_s26, 256 }
  0x99   : > { %865 = vmatprep.subr.bf16.mxu0 %v1001_v26  ;;  %p1134_p1 = scmp.lt.s32.totalorder %s1485_s8, %s1132_s26  ;;  %p1135_p4 = scmp.lt.s32.totalorder %s1133_s18, %s1127_s20 }
  0x9a   : > { %477 = vmatpush1.bf16.msra.mxu1 %v984_v12  ;;  %p1130_p2 = pneg %p1129_p12 }
  0x9b   : > { %478 = vmatprep.subr.bf16.mxu1 %v985_v13  ;;  %p1136_p0 = por %p1135_p4, %p1134_p1 }
  0x9c   : > { %866 = vmatpush3.bf16.msra.mxu0 %v1002_v27 }
  0x9d   : > { %867 = vmatprep.subr.bf16.mxu0 %v1003_v28  ;;  %p1137_p9 = pnand %p1136_p0, %p1130_p2 }
  0x9e   : > { %479 = vmatpush1.bf16.msra.mxu1 %v987_v14 }
  0x9f   : > { %480 = vmatprep.subr.bf16.mxu1 %v988_v15 }
  0xa0   : > { %868 = vmatpush3.bf16.msra.mxu0 %v1004_v29 }
  0xa1   : > { %869 = vmatprep.subr.bf16.mxu0 %v1005_v30 }
  0xa2   : > { %481 = vmatpush1.bf16.msra.mxu1 %v990_v16 }
  0xa3   : > { %482 = vmatprep.subr.bf16.mxu1 %v991_v17 }
  0xa4   : > { %870 = vmatpush3.bf16.msra.mxu0 %v1006_v31 }
  0xa5   : > { %871 = vmatprep.subr.bf16.mxu0 %v1007_v32 }
  0xa6   : > { %483 = vmatpush1.bf16.msra.mxu1 %v993_v18 }
  0xa7   : > { %484 = vmatprep.subr.bf16.mxu1 %v994_v19 }
  0xa8   : > { %872 = vmatpush3.bf16.msra.mxu0 %v1008_v33 }
  0xa9   : > { %873 = vmatprep.subr.bf16.mxu0 %v1009_v39 }
  0xaa   : > { %485 = vmatpush1.bf16.msra.mxu1 %v996_v20 }
  0xac   : > { %874 = vmatpush3.bf16.msra.mxu0 %v1010_v40 }
  0xad   : > { %875 = vmatprep.subr.bf16.mxu0 %v1011_v41 }
  0xb0   : > { %876 = vmatpush3.bf16.msra.mxu0 %v1012_v42 }
 0x165   : > { %v355_v34 = vpop.f32.mrb[0].mxu0 }
 0x166   : > { %v361_v35 = vpack.c.bf16 %v355_v34, %v355_v34  ;;  %v887_v36 = vpop.f32.mrb[1].mxu0 }
 0x167   : > { %v358_v37 = vpop.f32.mrb[2].mxu0 }
 0x168   : > { %v888_v38 = vpop.f32.mrb[3].mxu0  ;;  %503 = vmatmul.mubr.bf16.vlgmr.msra.gmra.mrb[0].mxu1 %v361_v35 }
 0x23b   : > { %v504_v50 = vpop.f32.mrb[0].mxu1 }
 0x23c   : > { %v505_v51 = vadd.f32 %v504_v50, %v383_v48  ;;  %v506_v52 = vpop.f32.mrb[1].mxu1 }
 0x23d   : > { %v507_v53 = vadd.f32 %v506_v52, %v387_v49  ;;  %v508_v54 = vpop.f32.mrb[2].mxu1 }
 0x23e   : > { %v511_v55 = vmax.f32 %v505_v51, 0.0  ;;  %v509_v56 = vpop.f32.mrb[3].mxu1 }
 0x23f   : > { %v512_v57 = vmax.f32 %v507_v53, 0.0 }
 0x240   : > { %v513_v59 = vpack.c.bf16 %v511_v55, %v511_v55 }
 0x241   : > { %v514_v58 = vpack.c.bf16 %v512_v57, %v512_v57 }
 0x243   : > { %682 = vmatprep.mubr.bf16.mxu0 %v514_v58 }
 0x244   : > { %683 = vmatmul.mubr.bf16.vlgmr.msra.gmra.mrb[4].mxu0 %v513_v59 }
 0x317   : > { %v877_v60 = vpop.f32.mrb[4].mxu0 }
 0x318   : > { %v878_v62 = vpop.f32.mrb[5].mxu0 }
 0x319   : > { %v879_v63 = vadd.f32 %v878_v62, %v877_v60  ;;  %v880_v0 = vpop.f32.mrb[6].mxu0 }
 0x31a   : > { %v881_v2 = vpop.f32.mrb[7].mxu0 }
 0x31b   : > { %v685_v3 = vadd.f32 %v879_v63, %v838_v61 }
 0x31d   : > { %v690_v4 = vadd.f32 %v685_v3, %v1467_v1 }
 0x31f   : > { %691 = vst [vmem:[%s308_s17] sm:$0xff] %v690_v4 }
 0x320   : > { %1140 = shalt.err (!%p1137_p9)
}
 0x321   : > { %s1141_s15 = scalar_lea.hbm %s1483_s11, 128  ;;  %s1145_s7 = scalar_lea.hbm %s1534_s6, 256 }
 0x322   : > { %p1142_p8 = scmp.ne.s32.totalorder %s1483_s11, %s1141_s15  ;;  %p1146_p6 = scmp.lt.u32.totalorder %s1483_s11, %s1534_s6 }
 0x323   : > { %p1147_p10 = scmp.lt.u32.totalorder %s1145_s7, %s1141_s15  ;;  %p1149_p7 = scmp.lt.u32.totalorder %s1141_s15, %s1483_s11 }
 0x324   : > { %p1143_p11 = pnand %p1142_p8, %p1399_p5 }
 0x325   : > { %p1148_p3 = por %p1147_p10, %p1146_p6 }
 0x326   : > { %p1144_p13 = pneg %p1143_p11 }
 0x327   : > { %p1150_p12 = por %p1149_p7, %p1148_p3 }
 0x329   : > { %p1151_p2 = pnand %p1150_p12, %p1144_p13 }
 0x32b   : > { %1154 = shalt.err (!%p1151_p2)
}
 0x32c   : > { %903 = dma.vmem_to_hbm [thread:$0]  (%p1399_p5), %s1485_s8, 128, %s1483_s11, %s693_s9  }
 0x32d PF: > { %s718_s17 = sand.u32 1, %s1193_s21   ;;  %p1554_p1 = scmp.ne.s32.totalorder %s1539_s28, 0 }
 0x32e   : > { %p1555_p4 = scmp.ge.s32.totalorder %s1205_s24, 2  ;;  %s719_s19 = scalar_lea.sflag [#allocation4], %s718_s17 }
 0x330   : > { %p920_p0 = pnand %p1555_p4, %p1554_p1 }
 0x332   : > { %1188 = dma.done.wait (!%p920_p0), %s719_s19, 128  }
 0x333   : > { %1190 = vsyncadd (!%p920_p0), %s719_s19, 4294967168  ;;  %p21_p9 = scmp.ge.s32.totalorder %s1385_s30, 4   ;;  %s1556_s21 = smov %s1197_s22 }
 0x334   : > { %s1557_s22 = smov %s1201_s23  ;;  %s1558_s23 = smov %s1395_s13 }
 0x335   : > { %s1559_s24 = smov %s1385_s30  ;;  %23 = sbr.rel (!%p21_p9) target bundleno = 7 (0x7), region = 102 }
 0x33c   :  { %724 = vsyncpa [#allocation3], 1 }
 0x33d   :  { %726 = vsyncpa [#allocation3 + $0x1], 1 }
 0x33e   :  { %727 = vsyncpa [#allocation6], 1 }
 0x33f   :  { %729 = vsyncpa [#allocation6 + $0x1], 1 }
 0x340   :  { %730 = vsyncpa [#allocation9], 1 }
 0x341   :  { %731 = vsyncpa [#allocation4], 1 }
 0x342   :  { %733 = vsyncpa [#allocation4 + $0x1], 1 }

</bundles_post_ra>
